<compile_context>
chip_gen: v6e
topology: v6e:2x2x1
jax: 0.10.0
libtpu: 0.0.40
codegen_flags: <defaults>
</compile_context>

<pallas_src>
import math
import functools

import jax
import jax.numpy as jnp
from jax import lax
from jax.experimental import pallas as pl
from jax.experimental.pallas import tpu as pltpu


def _pick_row_block(n):
    """Attention row-block size: prefer 256 (v6e/v7x MXU), must divide N."""
    for t in (256, 128, 64, 32, 16, 8):
        if t <= n and n % t == 0:
            return t
    return n


def _cma_kernel(x_ref, w1_ref, b1_ref, w2_ref, b2_ref,
                wq_ref, wqt_ref, wvt_ref, bv_ref,
                o_ref, qt_scr, vt_scr, acc_scr,
                *, c4, inv_factor, tm):
    """One batch element per grid step.

    x_ref        : (1, C, N) input slab (f32)
    w1/w2        : (C, C)  bf16 conv weights with BN scale folded in
    b1/b2        : (C, 1)  f32 folded BN biases
    wq           : (C, C)  bf16 stacked q(=k) head weights (rows i*C4:(i+1)*C4)
    wqt / wvt    : (C, C)  bf16 transposed stacked q / v head weights
    bv           : (1, C)  f32 stacked v biases (row vector)
    o_ref        : (1, C, N) output slab (f32)
    qt_scr/vt_scr: (N, C)  bf16 scratch holding q^T / v^T for row-block slicing
    acc_scr      : (C, N)  f32 output accumulator (holds residual + head outputs)
    """
    n = x_ref.shape[2]
    x = x_ref[0].astype(jnp.bfloat16)                                   # (C, N)

    # conv1 (BN1 scale folded) -> +bias -> relu
    h = jnp.dot(w1_ref[...], x, preferred_element_type=jnp.float32)
    h = jnp.maximum(h + b1_ref[...], 0.0)
    # conv2 (BN2 scale folded) -> +bias -> relu
    h = jnp.dot(w2_ref[...], h.astype(jnp.bfloat16),
                preferred_element_type=jnp.float32)
    h = jnp.maximum(h + b2_ref[...], 0.0)                               # (C, N) f32

    acc_scr[...] = h                                                    # residual
    h_bf = h.astype(jnp.bfloat16)

    # q in (C, N) layout (energy RHS) via a plain matmul, and q/v in (N, C)
    # layout (row-block LHS) via dim-0 contraction -- no explicit transposes.
    q_cn = jnp.dot(wq_ref[...], h_bf,
                   preferred_element_type=jnp.float32).astype(jnp.bfloat16)   # (C, N)
    q_nc = lax.dot_general(h_bf, wqt_ref[...], (((0,), (0,)), ((), ())),
                           preferred_element_type=jnp.float32)                # (N, C)
    v_nc = lax.dot_general(h_bf, wvt_ref[...], (((0,), (0,)), ((), ())),
                           preferred_element_type=jnp.float32) + bv_ref[...]  # (N, C)
    qt_scr[...] = q_nc.astype(jnp.bfloat16)
    vt_scr[...] = v_nc.astype(jnp.bfloat16)

    q_heads = [q_cn[i * c4:(i + 1) * c4, :] for i in range(4)]          # (C4, N) each

    def _row_block(start):
        # (tm, C) slabs of q^T / v^T for this query-row block.
        qt_blk = qt_scr[pl.ds(start, tm), :]
        vt_blk = vt_scr[pl.ds(start, tm), :]
        for i in range(4):                                              # 4 CWSA heads
            # energy rows [start:start+tm], all N columns live in lanes.
            e = jnp.dot(qt_blk[:, i * c4:(i + 1) * c4], q_heads[i],
                        preferred_element_type=jnp.float32) * inv_factor      # (tm, N)
            e = e - jnp.max(e, axis=-1, keepdims=True)
            p = jnp.exp(e)
            inv = pl.reciprocal(jnp.sum(p, axis=-1, keepdims=True), approx=True)
            attn = (p * inv).astype(jnp.bfloat16)                             # (tm, N)
            # x_r contribution: sum over this block's rows m of v[:, m] * attn[m, :]
            contrib = lax.dot_general(vt_blk[:, i * c4:(i + 1) * c4], attn,
                                      (((0,), (0,)), ((), ())),
                                      preferred_element_type=jnp.float32)     # (C4, N)
            acc_scr[i * c4:(i + 1) * c4, :] += contrib

    num_blocks = n // tm
    if num_blocks == 1:
        _row_block(0)                     # fully static path (small N)
    else:
        def body(mb, carry):
            _row_block(pl.multiple_of(mb * tm, tm))
            return carry
        lax.fori_loop(0, num_blocks, body, 0)

    o_ref[0] = acc_scr[...].astype(o_ref.dtype)


def channel_multi_attention(x, params):
    """x: (B, C, N) float32. params: dict of weights (see init_params)."""
    B, C, N = x.shape
    assert C % 4 == 0
    C4 = C // 4
    inv_factor = 1.0 / math.sqrt(C4)
    tm = _pick_row_block(N)

    # Fold eval-mode BatchNorm scale into the 1x1 conv weights (per out channel),
    # pre-transpose the stacked head weights, and ship MXU operands as bf16.
    w1f = (params["w1"] * params["bn1_scale"]).astype(jnp.bfloat16)
    w2f = (params["w2"] * params["bn2_scale"]).astype(jnp.bfloat16)
    b1 = params["bn1_bias"]
    b2 = params["bn2_bias"]
    wq = params["wq"].astype(jnp.bfloat16)
    wqt = params["wq"].T.astype(jnp.bfloat16)
    wvt = params["wv"].T.astype(jnp.bfloat16)
    bv_row = params["bv"].reshape(1, C)

    kernel = functools.partial(_cma_kernel, c4=C4, inv_factor=inv_factor, tm=tm)
    full = lambda shp: pl.BlockSpec(shp, lambda b: (0,) * len(shp))

    return pl.pallas_call(
        kernel,
        out_shape=jax.ShapeDtypeStruct((B, C, N), jnp.float32),
        grid_spec=pltpu.PrefetchScalarGridSpec(
            num_scalar_prefetch=0,
            grid=(B,),
            in_specs=[
                pl.BlockSpec((1, C, N), lambda b: (b, 0, 0)),   # x
                full((C, C)), full((C, 1)),                     # w1 (BN folded), b1
                full((C, C)), full((C, 1)),                     # w2 (BN folded), b2
                full((C, C)),                                   # wq   (stacked heads)
                full((C, C)),                                   # wq^T (stacked heads)
                full((C, C)),                                   # wv^T (stacked heads)
                full((1, C)),                                   # bv   (row vector)
            ],
            out_specs=pl.BlockSpec((1, C, N), lambda b: (b, 0, 0)),
            scratch_shapes=[
                pltpu.VMEM((N, C), jnp.bfloat16),   # q^T
                pltpu.VMEM((N, C), jnp.bfloat16),   # v^T
                pltpu.VMEM((C, N), jnp.float32),    # output accumulator
            ],
        ),
        compiler_params=pltpu.CompilerParams(
            dimension_semantics=("parallel",),
            vmem_limit_bytes=48 * 1024 * 1024),     # headroom under v7x's 64 MiB
    )(x, w1f, b1, w2f, b2, wq, wqt, wvt, bv_row)


def channel_multi_attention_ref(x, params):
    """Pure-JAX f32 reference matching the PyTorch module (eval-mode BN)."""
    C = x.shape[1]
    C4 = C // 4
    factor = math.sqrt(C4)

    def one(xb):                                       # xb: (C, N)
        h = jnp.maximum(params["w1"] @ xb * params["bn1_scale"] + params["bn1_bias"], 0.0)
        h = jnp.maximum(params["w2"] @ h * params["bn2_scale"] + params["bn2_bias"], 0.0)
        q = params["wq"] @ h
        v = params["wv"] @ h + params["bv"]
        outs = []
        for i in range(4):
            qi = q[i * C4:(i + 1) * C4]
            vi = v[i * C4:(i + 1) * C4]
            attn = jax.nn.softmax((qi.T @ qi) / factor, axis=-1)
            outs.append(vi @ attn)
        return jnp.concatenate(outs, axis=0) + h

    return jax.vmap(one)(x)


def init_params(key, C):
    """Deterministic synthetic parameters matching the PyTorch module shapes."""
    C4 = C // 4
    ks = jax.random.split(key, 12)
    p = {}
    # conv1 / conv2: Conv1d(C, C, 1, bias=False) -> weight (C, C)
    p["w1"] = jax.random.normal(ks[0], (C, C), jnp.float32) * 0.1
    p["w2"] = jax.random.normal(ks[1], (C, C), jnp.float32) * 0.1
    # BatchNorm1d (eval mode, folded): scale = gamma/sqrt(var+eps), bias = beta - mean*scale
    eps = 1e-5
    for name, kg, kb, km, kv in (("bn1", ks[2], ks[3], ks[4], ks[5]),
                                 ("bn2", ks[6], ks[7], ks[8], ks[9])):
        gamma = 1.0 + 0.1 * jax.random.normal(kg, (C,), jnp.float32)
        beta = 0.1 * jax.random.normal(kb, (C,), jnp.float32)
        mean = 0.1 * jax.random.normal(km, (C,), jnp.float32)
        var = jnp.abs(jax.random.normal(kv, (C,), jnp.float32)) + 0.5
        scale = gamma / jnp.sqrt(var + eps)
        bias = beta - mean * scale
        p[f"{name}_scale"] = scale.reshape(C, 1)
        p[f"{name}_bias"] = bias.reshape(C, 1)
    # 4 CWSA heads: q_conv(=k_conv, shared weight) (C/4, C); v_conv (C/4, C) + bias (C/4,)
    qkeys = jax.random.split(ks[10], 4)
    vkeys = jax.random.split(ks[11], 4)
    wq = jnp.concatenate(
        [jax.random.normal(qkeys[i], (C4, C), jnp.float32) * 0.1 for i in range(4)], axis=0)
    wv = jnp.concatenate(
        [jax.random.normal(vkeys[i], (C4, C), jnp.float32) * 0.1 for i in range(4)], axis=0)
    bv = jnp.concatenate(
        [0.01 * jax.random.normal(jax.random.fold_in(vkeys[i], 7), (C4,), jnp.float32)
         for i in range(4)], axis=0).reshape(C, 1)
    p["wq"], p["wv"], p["bv"] = wq, wv, bv
    return p


if __name__ == "__main__":
    key = jax.random.PRNGKey(0)
    B, C, N = 2, 16, 16           # small shapes: channels=16 (C/4=4), seq points=16
    kx, kp = jax.random.split(key)
    x = jax.random.normal(kx, (B, C, N), jnp.float32)
    params = init_params(kp, C)

    out = jax.block_until_ready(channel_multi_attention(x, params))
    assert out.shape == (B, C, N) and out.dtype == jnp.float32

    ref = channel_multi_attention_ref(x, params)
    assert jnp.allclose(out, ref, atol=2e-2, rtol=5e-2), \
        f"max abs err {float(jnp.max(jnp.abs(out - ref)))}"
    print("KERNEL_OK")
</pallas_src>

<mosaic_0001>
module attributes {stable_mosaic.version = 11 : i64} {
  func.func @_cma_kernel(%arg0: i32, %arg1: memref<1x16x16xf32, #tpu.memory_space<vmem>>, %arg2: memref<16x16xbf16, #tpu.memory_space<vmem>>, %arg3: memref<16x1xf32, #tpu.memory_space<vmem>>, %arg4: memref<16x16xbf16, #tpu.memory_space<vmem>>, %arg5: memref<16x1xf32, #tpu.memory_space<vmem>>, %arg6: memref<16x16xbf16, #tpu.memory_space<vmem>>, %arg7: memref<16x16xbf16, #tpu.memory_space<vmem>>, %arg8: memref<16x16xbf16, #tpu.memory_space<vmem>>, %arg9: memref<1x16xf32, #tpu.memory_space<vmem>>, %arg10: memref<1x16x16xf32, #tpu.memory_space<vmem>>, %arg11: memref<16x16xbf16, #tpu.memory_space<vmem>>, %arg12: memref<16x16xbf16, #tpu.memory_space<vmem>>, %arg13: memref<16x16xf32, #tpu.memory_space<vmem>>) attributes {dimension_semantics = [#tpu.dimension_semantics<parallel>], iteration_bounds = array<i64: 2>, scalar_prefetch = 0 : i64, scratch_operands = 3 : i64, tpu.core_type = #tpu.core_type<tc>, window_params = [{transform_indices = @transform_0, window_bounds = array<i64: 1, 16, 16>}, {pipeline_mode = #tpu.pipeline_mode<synchronous>, transform_indices = @transform_1, window_bounds = array<i64: 16, 16>}, {pipeline_mode = #tpu.pipeline_mode<synchronous>, transform_indices = @transform_2, window_bounds = array<i64: 16, 1>}, {pipeline_mode = #tpu.pipeline_mode<synchronous>, transform_indices = @transform_3, window_bounds = array<i64: 16, 16>}, {pipeline_mode = #tpu.pipeline_mode<synchronous>, transform_indices = @transform_4, window_bounds = array<i64: 16, 1>}, {pipeline_mode = #tpu.pipeline_mode<synchronous>, transform_indices = @transform_5, window_bounds = array<i64: 16, 16>}, {pipeline_mode = #tpu.pipeline_mode<synchronous>, transform_indices = @transform_6, window_bounds = array<i64: 16, 16>}, {pipeline_mode = #tpu.pipeline_mode<synchronous>, transform_indices = @transform_7, window_bounds = array<i64: 16, 16>}, {pipeline_mode = #tpu.pipeline_mode<synchronous>, transform_indices = @transform_8, window_bounds = array<i64: 1, 16>}, {transform_indices = @transform_9, window_bounds = array<i64: 1, 16, 16>}]} {
    %c0 = arith.constant 0 : index
    %c0_0 = arith.constant 0 : index
    %c0_1 = arith.constant 0 : index
    %0 = vector.load %arg1[%c0, %c0_0, %c0_1] : memref<1x16x16xf32, #tpu.memory_space<vmem>>, vector<1x16x16xf32>
    %1 = vector.shape_cast %0 : vector<1x16x16xf32> to vector<16x16xf32>
    %2 = arith.truncf %1 : vector<16x16xf32> to vector<16x16xbf16>
    %c0_2 = arith.constant 0 : index
    %c0_3 = arith.constant 0 : index
    %3 = vector.load %arg2[%c0_2, %c0_3] : memref<16x16xbf16, #tpu.memory_space<vmem>>, vector<16x16xbf16>
    %cst = arith.constant dense<0.000000e+00> : vector<16x16xf32>
    %4 = tpu.matmul %3, %2, %cst {dimension_numbers = #tpu.dot_dimension_numbers<[1], [0], [0], [1], [0, 0, 1, 1], [], []>} : vector<16x16xbf16>, vector<16x16xbf16>, vector<16x16xf32> -> vector<16x16xf32>
    %c0_4 = arith.constant 0 : index
    %c0_5 = arith.constant 0 : index
    %5 = vector.load %arg3[%c0_4, %c0_5] : memref<16x1xf32, #tpu.memory_space<vmem>>, vector<16x1xf32>
    %6 = vector.broadcast %5 : vector<16x1xf32> to vector<16x16xf32>
    %7 = arith.addf %4, %6 : vector<16x16xf32>
    %cst_6 = arith.constant 0.000000e+00 : f32
    %8 = vector.broadcast %cst_6 : f32 to vector<16x16xf32>
    %9 = arith.maximumf %7, %8 : vector<16x16xf32>
    %c0_7 = arith.constant 0 : index
    %c0_8 = arith.constant 0 : index
    %10 = vector.load %arg4[%c0_7, %c0_8] : memref<16x16xbf16, #tpu.memory_space<vmem>>, vector<16x16xbf16>
    %11 = arith.truncf %9 : vector<16x16xf32> to vector<16x16xbf16>
    %cst_9 = arith.constant dense<0.000000e+00> : vector<16x16xf32>
    %12 = tpu.matmul %10, %11, %cst_9 {dimension_numbers = #tpu.dot_dimension_numbers<[1], [0], [0], [1], [0, 0, 1, 1], [], []>} : vector<16x16xbf16>, vector<16x16xbf16>, vector<16x16xf32> -> vector<16x16xf32>
    %c0_10 = arith.constant 0 : index
    %c0_11 = arith.constant 0 : index
    %13 = vector.load %arg5[%c0_10, %c0_11] : memref<16x1xf32, #tpu.memory_space<vmem>>, vector<16x1xf32>
    %14 = vector.broadcast %13 : vector<16x1xf32> to vector<16x16xf32>
    %15 = arith.addf %12, %14 : vector<16x16xf32>
    %cst_12 = arith.constant 0.000000e+00 : f32
    %16 = vector.broadcast %cst_12 : f32 to vector<16x16xf32>
    %17 = arith.maximumf %15, %16 : vector<16x16xf32>
    %c0_13 = arith.constant 0 : index
    %c0_14 = arith.constant 0 : index
    %18 = vector.load %arg13[%c0_13, %c0_14] : memref<16x16xf32, #tpu.memory_space<vmem>>, vector<16x16xf32>
    tpu.vector_store %arg13[%c0_13, %c0_14], %17 {strides = array<i32>} : memref<16x16xf32, #tpu.memory_space<vmem>>, vector<16x16xf32>,
    %19 = arith.truncf %17 : vector<16x16xf32> to vector<16x16xbf16>
    %c0_15 = arith.constant 0 : index
    %c0_16 = arith.constant 0 : index
    %20 = vector.load %arg6[%c0_15, %c0_16] : memref<16x16xbf16, #tpu.memory_space<vmem>>, vector<16x16xbf16>
    %cst_17 = arith.constant dense<0.000000e+00> : vector<16x16xf32>
    %21 = tpu.matmul %20, %19, %cst_17 {dimension_numbers = #tpu.dot_dimension_numbers<[1], [0], [0], [1], [0, 0, 1, 1], [], []>} : vector<16x16xbf16>, vector<16x16xbf16>, vector<16x16xf32> -> vector<16x16xf32>
    %22 = arith.truncf %21 : vector<16x16xf32> to vector<16x16xbf16>
    %c0_18 = arith.constant 0 : index
    %c0_19 = arith.constant 0 : index
    %23 = vector.load %arg7[%c0_18, %c0_19] : memref<16x16xbf16, #tpu.memory_space<vmem>>, vector<16x16xbf16>
    %cst_20 = arith.constant dense<0.000000e+00> : vector<16x16xf32>
    %24 = tpu.matmul %19, %23, %cst_20 {dimension_numbers = #tpu.dot_dimension_numbers<[0], [0], [1], [1], [0, 1, 1, 1], [], []>} : vector<16x16xbf16>, vector<16x16xbf16>, vector<16x16xf32> -> vector<16x16xf32>
    %c0_21 = arith.constant 0 : index
    %c0_22 = arith.constant 0 : index
    %25 = vector.load %arg8[%c0_21, %c0_22] : memref<16x16xbf16, #tpu.memory_space<vmem>>, vector<16x16xbf16>
    %cst_23 = arith.constant dense<0.000000e+00> : vector<16x16xf32>
    %26 = tpu.matmul %19, %25, %cst_23 {dimension_numbers = #tpu.dot_dimension_numbers<[0], [0], [1], [1], [0, 1, 1, 1], [], []>} : vector<16x16xbf16>, vector<16x16xbf16>, vector<16x16xf32> -> vector<16x16xf32>
    %c0_24 = arith.constant 0 : index
    %c0_25 = arith.constant 0 : index
    %27 = vector.load %arg9[%c0_24, %c0_25] : memref<1x16xf32, #tpu.memory_space<vmem>>, vector<1x16xf32>
    %28 = vector.broadcast %27 : vector<1x16xf32> to vector<16x16xf32>
    %29 = arith.addf %26, %28 : vector<16x16xf32>
    %30 = arith.truncf %24 : vector<16x16xf32> to vector<16x16xbf16>
    %c0_26 = arith.constant 0 : index
    %c0_27 = arith.constant 0 : index
    %31 = vector.load %arg11[%c0_26, %c0_27] : memref<16x16xbf16, #tpu.memory_space<vmem>>, vector<16x16xbf16>
    tpu.vector_store %arg11[%c0_26, %c0_27], %30 {strides = array<i32>} : memref<16x16xbf16, #tpu.memory_space<vmem>>, vector<16x16xbf16>,
    %32 = arith.truncf %29 : vector<16x16xf32> to vector<16x16xbf16>
    %c0_28 = arith.constant 0 : index
    %c0_29 = arith.constant 0 : index
    %33 = vector.load %arg12[%c0_28, %c0_29] : memref<16x16xbf16, #tpu.memory_space<vmem>>, vector<16x16xbf16>
    tpu.vector_store %arg12[%c0_28, %c0_29], %32 {strides = array<i32>} : memref<16x16xbf16, #tpu.memory_space<vmem>>, vector<16x16xbf16>,
    %34 = vector.extract_strided_slice %22 {offsets = [0, 0], sizes = [4, 16], strides = [1, 1]} : vector<16x16xbf16> to vector<4x16xbf16>
    %35 = vector.extract_strided_slice %22 {offsets = [4, 0], sizes = [4, 16], strides = [1, 1]} : vector<16x16xbf16> to vector<4x16xbf16>
    %36 = vector.extract_strided_slice %22 {offsets = [8, 0], sizes = [4, 16], strides = [1, 1]} : vector<16x16xbf16> to vector<4x16xbf16>
    %37 = vector.extract_strided_slice %22 {offsets = [12, 0], sizes = [4, 16], strides = [1, 1]} : vector<16x16xbf16> to vector<4x16xbf16>
    %c0_30 = arith.constant 0 : index
    %c0_31 = arith.constant 0 : index
    %38 = vector.load %arg11[%c0_30, %c0_31] : memref<16x16xbf16, #tpu.memory_space<vmem>>, vector<16x16xbf16>
    %c0_32 = arith.constant 0 : index
    %c0_33 = arith.constant 0 : index
    %39 = vector.load %arg12[%c0_32, %c0_33] : memref<16x16xbf16, #tpu.memory_space<vmem>>, vector<16x16xbf16>
    %40 = vector.extract_strided_slice %38 {offsets = [0, 0], sizes = [16, 4], strides = [1, 1]} : vector<16x16xbf16> to vector<16x4xbf16>
    %cst_34 = arith.constant dense<0.000000e+00> : vector<16x16xf32>
    %41 = tpu.matmul %40, %34, %cst_34 {dimension_numbers = #tpu.dot_dimension_numbers<[1], [0], [0], [1], [0, 0, 1, 1], [], []>} : vector<16x4xbf16>, vector<4x16xbf16>, vector<16x16xf32> -> vector<16x16xf32>
    %cst_35 = arith.constant 5.000000e-01 : f32
    %42 = vector.broadcast %cst_35 : f32 to vector<16x16xf32>
    %43 = arith.mulf %41, %42 : vector<16x16xf32>
    %cst_36 = arith.constant dense<0xFF800000> : vector<16xf32>
    %44 = vector.multi_reduction <maximumf>, %43, %cst_36 [1] : vector<16x16xf32> to vector<16xf32>
    %45 = vector.shape_cast %44 : vector<16xf32> to vector<16x1xf32>
    %46 = vector.broadcast %45 : vector<16x1xf32> to vector<16x16xf32>
    %47 = arith.subf %43, %46 : vector<16x16xf32>
    %48 = math.exp %47 : vector<16x16xf32>
    %cst_37 = arith.constant dense<0.000000e+00> : vector<16xf32>
    %49 = vector.multi_reduction <add>, %48, %cst_37 [1] : vector<16x16xf32> to vector<16xf32>
    %50 = vector.shape_cast %49 : vector<16xf32> to vector<16x1xf32>
    %51 = tpu.reciprocal %50 {approx = true} : vector<16x1xf32> -> vector<16x1xf32>
    %52 = vector.broadcast %51 : vector<16x1xf32> to vector<16x16xf32>
    %53 = arith.mulf %48, %52 : vector<16x16xf32>
    %54 = arith.truncf %53 : vector<16x16xf32> to vector<16x16xbf16>
    %55 = vector.extract_strided_slice %39 {offsets = [0, 0], sizes = [16, 4], strides = [1, 1]} : vector<16x16xbf16> to vector<16x4xbf16>
    %cst_38 = arith.constant dense<0.000000e+00> : vector<4x16xf32>
    %56 = tpu.matmul %55, %54, %cst_38 {dimension_numbers = #tpu.dot_dimension_numbers<[0], [0], [1], [1], [0, 1, 1, 1], [], []>} : vector<16x4xbf16>, vector<16x16xbf16>, vector<4x16xf32> -> vector<4x16xf32>
    %c0_39 = arith.constant 0 : index
    %c0_40 = arith.constant 0 : index
    %57 = vector.load %arg13[%c0_39, %c0_40] : memref<16x16xf32, #tpu.memory_space<vmem>>, vector<4x16xf32>
    %58 = arith.addf %57, %56 : vector<4x16xf32>
    %c0_41 = arith.constant 0 : index
    %c0_42 = arith.constant 0 : index
    %59 = vector.load %arg13[%c0_41, %c0_42] : memref<16x16xf32, #tpu.memory_space<vmem>>, vector<4x16xf32>
    tpu.vector_store %arg13[%c0_41, %c0_42], %58 {strides = array<i32>} : memref<16x16xf32, #tpu.memory_space<vmem>>, vector<4x16xf32>,
    %60 = vector.extract_strided_slice %38 {offsets = [0, 4], sizes = [16, 4], strides = [1, 1]} : vector<16x16xbf16> to vector<16x4xbf16>
    %cst_43 = arith.constant dense<0.000000e+00> : vector<16x16xf32>
    %61 = tpu.matmul %60, %35, %cst_43 {dimension_numbers = #tpu.dot_dimension_numbers<[1], [0], [0], [1], [0, 0, 1, 1], [], []>} : vector<16x4xbf16>, vector<4x16xbf16>, vector<16x16xf32> -> vector<16x16xf32>
    %cst_44 = arith.constant 5.000000e-01 : f32
    %62 = vector.broadcast %cst_44 : f32 to vector<16x16xf32>
    %63 = arith.mulf %61, %62 : vector<16x16xf32>
    %cst_45 = arith.constant dense<0xFF800000> : vector<16xf32>
    %64 = vector.multi_reduction <maximumf>, %63, %cst_45 [1] : vector<16x16xf32> to vector<16xf32>
    %65 = vector.shape_cast %64 : vector<16xf32> to vector<16x1xf32>
    %66 = vector.broadcast %65 : vector<16x1xf32> to vector<16x16xf32>
    %67 = arith.subf %63, %66 : vector<16x16xf32>
    %68 = math.exp %67 : vector<16x16xf32>
    %cst_46 = arith.constant dense<0.000000e+00> : vector<16xf32>
    %69 = vector.multi_reduction <add>, %68, %cst_46 [1] : vector<16x16xf32> to vector<16xf32>
    %70 = vector.shape_cast %69 : vector<16xf32> to vector<16x1xf32>
    %71 = tpu.reciprocal %70 {approx = true} : vector<16x1xf32> -> vector<16x1xf32>
    %72 = vector.broadcast %71 : vector<16x1xf32> to vector<16x16xf32>
    %73 = arith.mulf %68, %72 : vector<16x16xf32>
    %74 = arith.truncf %73 : vector<16x16xf32> to vector<16x16xbf16>
    %75 = vector.extract_strided_slice %39 {offsets = [0, 4], sizes = [16, 4], strides = [1, 1]} : vector<16x16xbf16> to vector<16x4xbf16>
    %cst_47 = arith.constant dense<0.000000e+00> : vector<4x16xf32>
    %76 = tpu.matmul %75, %74, %cst_47 {dimension_numbers = #tpu.dot_dimension_numbers<[0], [0], [1], [1], [0, 1, 1, 1], [], []>} : vector<16x4xbf16>, vector<16x16xbf16>, vector<4x16xf32> -> vector<4x16xf32>
    %c4 = arith.constant 4 : index
    %c0_48 = arith.constant 0 : index
    %77 = vector.load %arg13[%c4, %c0_48] : memref<16x16xf32, #tpu.memory_space<vmem>>, vector<4x16xf32>
    %78 = arith.addf %77, %76 : vector<4x16xf32>
    %c4_49 = arith.constant 4 : index
    %c0_50 = arith.constant 0 : index
    %79 = vector.load %arg13[%c4_49, %c0_50] : memref<16x16xf32, #tpu.memory_space<vmem>>, vector<4x16xf32>
    tpu.vector_store %arg13[%c4_49, %c0_50], %78 {strides = array<i32>} : memref<16x16xf32, #tpu.memory_space<vmem>>, vector<4x16xf32>,
    %80 = vector.extract_strided_slice %38 {offsets = [0, 8], sizes = [16, 4], strides = [1, 1]} : vector<16x16xbf16> to vector<16x4xbf16>
    %cst_51 = arith.constant dense<0.000000e+00> : vector<16x16xf32>
    %81 = tpu.matmul %80, %36, %cst_51 {dimension_numbers = #tpu.dot_dimension_numbers<[1], [0], [0], [1], [0, 0, 1, 1], [], []>} : vector<16x4xbf16>, vector<4x16xbf16>, vector<16x16xf32> -> vector<16x16xf32>
    %cst_52 = arith.constant 5.000000e-01 : f32
    %82 = vector.broadcast %cst_52 : f32 to vector<16x16xf32>
    %83 = arith.mulf %81, %82 : vector<16x16xf32>
    %cst_53 = arith.constant dense<0xFF800000> : vector<16xf32>
    %84 = vector.multi_reduction <maximumf>, %83, %cst_53 [1] : vector<16x16xf32> to vector<16xf32>
    %85 = vector.shape_cast %84 : vector<16xf32> to vector<16x1xf32>
    %86 = vector.broadcast %85 : vector<16x1xf32> to vector<16x16xf32>
    %87 = arith.subf %83, %86 : vector<16x16xf32>
    %88 = math.exp %87 : vector<16x16xf32>
    %cst_54 = arith.constant dense<0.000000e+00> : vector<16xf32>
    %89 = vector.multi_reduction <add>, %88, %cst_54 [1] : vector<16x16xf32> to vector<16xf32>
    %90 = vector.shape_cast %89 : vector<16xf32> to vector<16x1xf32>
    %91 = tpu.reciprocal %90 {approx = true} : vector<16x1xf32> -> vector<16x1xf32>
    %92 = vector.broadcast %91 : vector<16x1xf32> to vector<16x16xf32>
    %93 = arith.mulf %88, %92 : vector<16x16xf32>
    %94 = arith.truncf %93 : vector<16x16xf32> to vector<16x16xbf16>
    %95 = vector.extract_strided_slice %39 {offsets = [0, 8], sizes = [16, 4], strides = [1, 1]} : vector<16x16xbf16> to vector<16x4xbf16>
    %cst_55 = arith.constant dense<0.000000e+00> : vector<4x16xf32>
    %96 = tpu.matmul %95, %94, %cst_55 {dimension_numbers = #tpu.dot_dimension_numbers<[0], [0], [1], [1], [0, 1, 1, 1], [], []>} : vector<16x4xbf16>, vector<16x16xbf16>, vector<4x16xf32> -> vector<4x16xf32>
    %c8 = arith.constant 8 : index
    %c0_56 = arith.constant 0 : index
    %97 = vector.load %arg13[%c8, %c0_56] : memref<16x16xf32, #tpu.memory_space<vmem>>, vector<4x16xf32>
    %98 = arith.addf %97, %96 : vector<4x16xf32>
    %c8_57 = arith.constant 8 : index
    %c0_58 = arith.constant 0 : index
    %99 = vector.load %arg13[%c8_57, %c0_58] : memref<16x16xf32, #tpu.memory_space<vmem>>, vector<4x16xf32>
    tpu.vector_store %arg13[%c8_57, %c0_58], %98 {strides = array<i32>} : memref<16x16xf32, #tpu.memory_space<vmem>>, vector<4x16xf32>,
    %100 = vector.extract_strided_slice %38 {offsets = [0, 12], sizes = [16, 4], strides = [1, 1]} : vector<16x16xbf16> to vector<16x4xbf16>
    %cst_59 = arith.constant dense<0.000000e+00> : vector<16x16xf32>
    %101 = tpu.matmul %100, %37, %cst_59 {dimension_numbers = #tpu.dot_dimension_numbers<[1], [0], [0], [1], [0, 0, 1, 1], [], []>} : vector<16x4xbf16>, vector<4x16xbf16>, vector<16x16xf32> -> vector<16x16xf32>
    %cst_60 = arith.constant 5.000000e-01 : f32
    %102 = vector.broadcast %cst_60 : f32 to vector<16x16xf32>
    %103 = arith.mulf %101, %102 : vector<16x16xf32>
    %cst_61 = arith.constant dense<0xFF800000> : vector<16xf32>
    %104 = vector.multi_reduction <maximumf>, %103, %cst_61 [1] : vector<16x16xf32> to vector<16xf32>
    %105 = vector.shape_cast %104 : vector<16xf32> to vector<16x1xf32>
    %106 = vector.broadcast %105 : vector<16x1xf32> to vector<16x16xf32>
    %107 = arith.subf %103, %106 : vector<16x16xf32>
    %108 = math.exp %107 : vector<16x16xf32>
    %cst_62 = arith.constant dense<0.000000e+00> : vector<16xf32>
    %109 = vector.multi_reduction <add>, %108, %cst_62 [1] : vector<16x16xf32> to vector<16xf32>
    %110 = vector.shape_cast %109 : vector<16xf32> to vector<16x1xf32>
    %111 = tpu.reciprocal %110 {approx = true} : vector<16x1xf32> -> vector<16x1xf32>
    %112 = vector.broadcast %111 : vector<16x1xf32> to vector<16x16xf32>
    %113 = arith.mulf %108, %112 : vector<16x16xf32>
    %114 = arith.truncf %113 : vector<16x16xf32> to vector<16x16xbf16>
    %115 = vector.extract_strided_slice %39 {offsets = [0, 12], sizes = [16, 4], strides = [1, 1]} : vector<16x16xbf16> to vector<16x4xbf16>
    %cst_63 = arith.constant dense<0.000000e+00> : vector<4x16xf32>
    %116 = tpu.matmul %115, %114, %cst_63 {dimension_numbers = #tpu.dot_dimension_numbers<[0], [0], [1], [1], [0, 1, 1, 1], [], []>} : vector<16x4xbf16>, vector<16x16xbf16>, vector<4x16xf32> -> vector<4x16xf32>
    %c12 = arith.constant 12 : index
    %c0_64 = arith.constant 0 : index
    %117 = vector.load %arg13[%c12, %c0_64] : memref<16x16xf32, #tpu.memory_space<vmem>>, vector<4x16xf32>
    %118 = arith.addf %117, %116 : vector<4x16xf32>
    %c12_65 = arith.constant 12 : index
    %c0_66 = arith.constant 0 : index
    %119 = vector.load %arg13[%c12_65, %c0_66] : memref<16x16xf32, #tpu.memory_space<vmem>>, vector<4x16xf32>
    tpu.vector_store %arg13[%c12_65, %c0_66], %118 {strides = array<i32>} : memref<16x16xf32, #tpu.memory_space<vmem>>, vector<4x16xf32>,
    %c0_67 = arith.constant 0 : index
    %c0_68 = arith.constant 0 : index
    %120 = vector.load %arg13[%c0_67, %c0_68] : memref<16x16xf32, #tpu.memory_space<vmem>>, vector<16x16xf32>
    %c0_69 = arith.constant 0 : index
    %c0_70 = arith.constant 0 : index
    %c0_71 = arith.constant 0 : index
    %121 = vector.load %arg10[%c0_69, %c0_70, %c0_71] : memref<1x16x16xf32, #tpu.memory_space<vmem>>, vector<1x16x16xf32>
    %122 = vector.shape_cast %121 : vector<1x16x16xf32> to vector<16x16xf32>
    %123 = vector.shape_cast %120 : vector<16x16xf32> to vector<1x16x16xf32>
    tpu.vector_store %arg10[%c0_69, %c0_70, %c0_71], %123 {strides = array<i32>} : memref<1x16x16xf32, #tpu.memory_space<vmem>>, vector<1x16x16xf32>,
    return
  }
  func.func @transform_0(%arg0: i32) -> (i32, i32, i32) {
    %c0_i32 = arith.constant 0 : i32
    %c0_i32_0 = arith.constant 0 : i32
    %c0_i32_1 = arith.constant 0 : i32
    return %arg0, %c0_i32, %c0_i32_0 : i32, i32, i32
  }
  func.func @transform_1(%arg0: i32) -> (i32, i32) {
    %c0_i32 = arith.constant 0 : i32
    %c0_i32_0 = arith.constant 0 : i32
    %c0_i32_1 = arith.constant 0 : i32
    return %c0_i32, %c0_i32_0 : i32, i32
  }
  func.func @transform_2(%arg0: i32) -> (i32, i32) {
    %c0_i32 = arith.constant 0 : i32
    %c0_i32_0 = arith.constant 0 : i32
    %c0_i32_1 = arith.constant 0 : i32
    return %c0_i32, %c0_i32_0 : i32, i32
  }
  func.func @transform_3(%arg0: i32) -> (i32, i32) {
    %c0_i32 = arith.constant 0 : i32
    %c0_i32_0 = arith.constant 0 : i32
    %c0_i32_1 = arith.constant 0 : i32
    return %c0_i32, %c0_i32_0 : i32, i32
  }
  func.func @transform_4(%arg0: i32) -> (i32, i32) {
    %c0_i32 = arith.constant 0 : i32
    %c0_i32_0 = arith.constant 0 : i32
    %c0_i32_1 = arith.constant 0 : i32
    return %c0_i32, %c0_i32_0 : i32, i32
  }
  func.func @transform_5(%arg0: i32) -> (i32, i32) {
    %c0_i32 = arith.constant 0 : i32
    %c0_i32_0 = arith.constant 0 : i32
    %c0_i32_1 = arith.constant 0 : i32
    return %c0_i32, %c0_i32_0 : i32, i32
  }
  func.func @transform_6(%arg0: i32) -> (i32, i32) {
    %c0_i32 = arith.constant 0 : i32
    %c0_i32_0 = arith.constant 0 : i32
    %c0_i32_1 = arith.constant 0 : i32
    return %c0_i32, %c0_i32_0 : i32, i32
  }
  func.func @transform_7(%arg0: i32) -> (i32, i32) {
    %c0_i32 = arith.constant 0 : i32
    %c0_i32_0 = arith.constant 0 : i32
    %c0_i32_1 = arith.constant 0 : i32
    return %c0_i32, %c0_i32_0 : i32, i32
  }
  func.func @transform_8(%arg0: i32) -> (i32, i32) {
    %c0_i32 = arith.constant 0 : i32
    %c0_i32_0 = arith.constant 0 : i32
    %c0_i32_1 = arith.constant 0 : i32
    return %c0_i32, %c0_i32_0 : i32, i32
  }
  func.func @transform_9(%arg0: i32) -> (i32, i32, i32) {
    %c0_i32 = arith.constant 0 : i32
    %c0_i32_0 = arith.constant 0 : i32
    %c0_i32_1 = arith.constant 0 : i32
    return %arg0, %c0_i32, %c0_i32_0 : i32, i32, i32
  }
}

</mosaic_0001>

<bundles_post_ra>
// kernel: tpu_custom_call.1
= control target key start
LH: loop header
LB: loop body
LE: loop exit
PB: predicated region body
PF: predicated region fallthrough
CT: control target
= control target key end

     0   :  { %14 = vsyncpa [#allocation6], 0  ;;  %s2233_s0 = inlined_call_operand.vmem [shape: f32[2,16,16], index: 0, kind: input, shape index: {}]   ;;  %s2234_s1 = inlined_call_operand.hbm [shape: bf16[16,16], index: 1, kind: input, shape index: {}]   ;;  %s2235_s2 = inlined_call_operand.vmem [shape: f32[16,1], index: 2, kind: input, shape index: {}]   ;;  %s2236_s3 = inlined_call_operand.hbm [shape: bf16[16,16], index: 3, kind: input, shape index: {}]   ;;  %s2237_s4 = inlined_call_operand.vmem [shape: f32[16,1], index: 4, kind: input, shape index: {}]   ;;  %s2238_s5 = inlined_call_operand.vmem [shape: bf16[16,16], index: 5, kind: input, shape index: {}]   ;;  %s2239_s6 = inlined_call_operand.hbm [shape: bf16[16,16], index: 6, kind: input, shape index: {}]   ;;  %s2240_s7 = inlined_call_operand.hbm [shape: bf16[16,16], index: 7, kind: input, shape index: {}]   ;;  %s2241_s8 = inlined_call_operand.vmem [shape: f32[1,16], index: 8, kind: input, shape index: {}]   ;;  %s2242_s9 = inlined_call_operand.hbm [shape: f32[2,16,16], index: 9, kind: output, shape index: {}]  }
   0x1   :  { %15 = vsyncpa [#allocation9], 0 }
   0x2   :  { %16 = vsyncpa [#allocation12], 0 }
   0x3   :  { %17 = vsyncpa [#allocation7], 0 }
   0x4   :  { %19 = vsyncpa [#allocation7 + $0x1], 0  ;;  %s1948_s30 = smov 0   ;;  %s1950_s10 = smov 0  }
   0x5   :  { %s1952_s11 = smov 0   ;;  %s1954_s12 = smov 0  }
   0x6 LB: > { %s1969_s13 = sadd.s32 4294967295, %s1881_s12   ;;  %s1419_s14 = sadd.s32 4294967294, %s1881_s12   ;;  %s1881_s12 = sphi %s1954_s12, %s2250_s12   ;;  %s1877_s11 = sphi %s1952_s11, %s2249_s11   ;;  %s1873_s10 = sphi %s1950_s10, %s2248_s10   ;;  %s1869_s30 = sphi %s1948_s30, %s2247_s30  }
   0x7   : > { %s1973_s15 = sadd.s32 1, %s1881_s12   ;;  %s226_s16 = sadd.s32 1, %s1877_s11 }
   0x8   : > { %s223_s17 = ssub.s32 %s1881_s12, %s1973_s15  ;;  %p236_p0 = scmp.ne.s32.totalorder %s1877_s11, %s1873_s10 }
   0x9   : > { %p224_p1 = scmp.eq.s32.totalorder %s223_s17, 0  ;;  %p237_p2 = scmp.eq.s32.totalorder %s1969_s13, 1 }
   0xa   : > { %p242_p3 = scmp.ne.s32.totalorder %s1873_s10, %s1869_s30  ;;  %p243_p4 = scmp.eq.s32.totalorder %s1419_s14, 1 }
   0xb   : > { %s1984_s18 = scalar_select %p224_p1, %s1877_s11, %s226_s16  }
   0xc   : > { %p1986_p5 = por %p237_p2, %p236_p0  ;;  %p1990_p6 = por %p243_p4, %p242_p3 }
   0xd   : > { %p1420_p7 = scmp.ge.s32.totalorder %s1881_s12, 1  ;;  %p250_p8 = scmp.lt.s32.totalorder %s1881_s12, 3 }
   0xe   : > { %p1609_p9 = scmp.eq.s32.totalorder %s1969_s13, 0  ;;  %s1883_s22 = smov [#allocation8]  }
   0xf   : > { %p1997_p10 = pnand %p1420_p7, %p250_p8  ;;  %s278_s23 = sshll.u32 %s1883_s22, 4  ;;  %s279_s23 = int_to_ptr.vmem [resolvable:$true] %s278_s23 }
  0x10   : > { %s1884_s25 = smov [#allocation5]   ;;  %s1885_s27 = smov [#allocation10]  }
  0x11   : > { %p1592_p11 = pneg %p1997_p10  ;;  %s262_s26 = sshll.u32 %s1884_s25, 4  ;;  %s263_s26 = int_to_ptr.vmem [resolvable:$true] %s262_s26 }
  0x12   : > { %s297_s28 = sshll.u32 %s1885_s27, 4  ;;  %s1716_s29 = scalar_lea.vmem %s279_s23, 128  ;;  %s298_s28 = int_to_ptr.vmem [resolvable:$true] %s297_s28 }
  0x13   : > { %p2005_p12 = pnand %p1609_p9, %p1592_p11  ;;  %p1717_p0 = scmp.ne.s32.totalorder %s279_s23, %s1716_s29 }
  0x14   : > { %p1724_p3 = scmp.lt.s32.totalorder %s279_s23, %s279_s23  ;;  %p1725_p4 = scmp.lt.s32.totalorder %s1716_s29, %s1716_s29 }
  0x15   : > { %p1707_p13 = pneg %p2005_p12 }
  0x16   : > { %p1726_p7 = por %p1725_p4, %p1724_p3 }
  0x17   : > { %p1719_p1 = pnand %p1717_p0, %p1707_p13 }
  0x19   : > { %p1720_p2 = pneg %p1719_p1 }
  0x1b   : > { %p1727_p8 = pnand %p1726_p7, %p1720_p2 }
  0x1d   : > { %1730 = shalt.err (!%p1727_p8)
}
  0x1e   : > { %s1886_s14 = smov 64   ;;  %s1887_s16 = smov 4  }
  0x1f   : > { %1598 = dma.hbm_to_vmem [thread:$0]  (!%p2005_p12), %s2236_s3, 128, %s279_s23, [#allocation9], %s1886_s14, %s1886_s14, %s1887_s16  }
  0x20   : > { %s1742_s25 = scalar_lea.vmem %s263_s26, 128  ;;  %p1750_p2 = scmp.lt.s32.totalorder %s263_s26, %s263_s26 }
  0x21   : > { %p1743_p11 = scmp.ne.s32.totalorder %s263_s26, %s1742_s25  ;;  %p1751_p3 = scmp.lt.s32.totalorder %s1742_s25, %s1742_s25 }
  0x23   : > { %p1745_p0 = pnand %p1743_p11, %p1707_p13  ;;  %p1752_p4 = por %p1751_p3, %p1750_p2 }
  0x25   : > { %p1746_p1 = pneg %p1745_p0 }
  0x27   : > { %p1753_p7 = pnand %p1752_p4, %p1746_p1 }
  0x29   : > { %1756 = shalt.err (!%p1753_p7)
}
  0x2a   : > { %1595 = dma.hbm_to_vmem [thread:$0]  (!%p2005_p12), %s2234_s1, 128, %s263_s26, [#allocation6], %s1886_s14, %s1886_s14, %s1887_s16  }
  0x2b   : > { %s1768_s23 = scalar_lea.vmem %s298_s28, 128  ;;  %p1776_p2 = scmp.lt.s32.totalorder %s298_s28, %s298_s28 }
  0x2c   : > { %p1769_p8 = scmp.ne.s32.totalorder %s298_s28, %s1768_s23  ;;  %p1777_p1 = scmp.lt.s32.totalorder %s1768_s23, %s1768_s23 }
  0x2e   : > { %p1771_p11 = pnand %p1769_p8, %p1707_p13  ;;  %p1778_p3 = por %p1777_p1, %p1776_p2 }
  0x30   : > { %p1772_p0 = pneg %p1771_p11 }
  0x32   : > { %p1779_p4 = pnand %p1778_p3, %p1772_p0 }
  0x34   : > { %1782 = shalt.err (!%p1779_p4)
}
  0x35   : > { %1601 = dma.hbm_to_vmem [thread:$0]  (!%p2005_p12), %s2239_s6, 128, %s298_s28, [#allocation9], %s1886_s14, %s1886_s14, %s1887_s16  }
  0x36   : > { %s1888_s26 = smov [#allocation11]  }
  0x37   : > { %s310_s25 = sshll.u32 %s1888_s26, 4  ;;  %s311_s25 = int_to_ptr.vmem [resolvable:$true] %s310_s25 }
  0x38   : > { %s1794_s27 = scalar_lea.vmem %s311_s25, 128  ;;  %p1802_p0 = scmp.lt.s32.totalorder %s311_s25, %s311_s25 }
  0x39   : > { %p1795_p7 = scmp.ne.s32.totalorder %s311_s25, %s1794_s27  ;;  %p1803_p2 = scmp.lt.s32.totalorder %s1794_s27, %s1794_s27 }
  0x3b   : > { %p1797_p8 = pnand %p1795_p7, %p1707_p13  ;;  %p1804_p1 = por %p1803_p2, %p1802_p0 }
  0x3d   : > { %p1798_p11 = pneg %p1797_p8 }
  0x3f   : > { %p1805_p3 = pnand %p1804_p1, %p1798_p11 }
  0x41   : > { %1808 = shalt.err (!%p1805_p3)
}
  0x42   : > { %1604 = dma.hbm_to_vmem [thread:$0]  (!%p2005_p12), %s2240_s7, 128, %s311_s25, [#allocation12], %s1886_s14, %s1886_s14, %s1887_s16  }
  0x43   : > { %337 = sbr.rel (%p1997_p10) target bundleno = 1669 (0x685), region = 56 }
  0x48   : > { %1852 = dma.done.wait (%p1609_p9), [#allocation6], 128  }
  0x49   : > { %1854 = vsyncadd (%p1609_p9), [#allocation6], 4294967168 }
  0x4a   : > { %1856 = dma.done.wait (%p1609_p9), [#allocation9], 256  }
  0x4b   : > { %1858 = vsyncadd (%p1609_p9), [#allocation9], 4294967040 }
  0x4c   : > { %1860 = dma.done.wait (%p1609_p9), [#allocation12], 128  }
  0x4d   : > { %1862 = vsyncadd (%p1609_p9), [#allocation12], 4294967168  ;;  %p385_p10 = scmp.lt.s32.totalorder %s1969_s13, 1  ;;  %v1889_v0 = vmov 0.0   ;;  %vm1890_vm0 = vmmov 0   ;;  %v1891_v1 = vmov 0  }
  0x4e   : > { %1496 = vmatprep.subr.bf16.mxu0 %v1889_v0  ;;  %1498 = vmatprep.mubr.msk.bf16.mxu0 %vm1890_vm0, %v1889_v0  ;;  %v1666_v5 = vld [vmem:[#allocation5] sm:$0xff]   ;;  %vm413_vm1 = vcmask 130048   ;;  %v397_v7 = vld [vmem:[%s2235_s2 + $0x8] sm:$0xff]  ;;  %v1669_v22 = vld [vmem:[#allocation10] sm:$0xff]   ;;  %vm739_vm2 = vcmask 1041408   ;;  %vm713_vm3 = vcmask 125952  }
  0x4f   : > { %s386_s21 = scalar_select %p385_p10, %s1969_s13, 1  ;;  %1664 = vset.pattern.permute.xlu0 %v1891_v1  ;;  %1502 = vmatprep.subr.bf16.mxu1 %v1889_v0  ;;  %v396_v6 = vld [vmem:[%s2235_s2] sm:$0xff]  ;;  %v464_v9 = vld [vmem:[%s2237_s4 + $0x8] sm:$0xff]  ;;  %v1670_v35 = vld [vmem:[#allocation11] sm:$0xff]   ;;  %vm735_vm4 = vcmask 31744  }
  0x50   : > { %1504 = vmatprep.mubr.msk.bf16.mxu1 %vm1890_vm0, %v1889_v0  ;;  %1665 = vset.pattern.permute.xlu1 %v1891_v1  ;;  %v463_v8 = vld [vmem:[%s2237_s4] sm:$0xff]  ;;  %v1667_v21 = vld [vmem:[#allocation8] sm:$0xff]   ;;  %s1892_s17 = smov 124   ;;  %s1893_s22 = smov 120  }
  0x51   : > { %s1464_s24 = sshll.u32 %s386_s21, 4  ;;  %400 = vperm.xlu0 %1664, %v396_v6   ;;  %467 = vperm.xlu1 %1665, %v463_v8   ;;  %v1668_v34 = vld [vmem:[%s2238_s5] sm:$0xff]   ;;  %s1894_s26 = smov 116  }
  0x52   : > { %s389_s23 = scalar_lea.vmem %s2233_s0, %s1464_s24  ;;  %v1442_v49 = vld [vmem:[%s2241_s8] ss:$0 sm:$0xff]  ;;  %s382_s25 = sand.u32 1, %s1873_s10  }
  0x53   : > { %v391_v2 = vld [vmem:[%s389_s23] sm:$0xff]  ;;  %v392_v3 = vld [vmem:[%s389_s23 + $0x8] sm:$0xff]  ;;  %s1431_s27 = sshll.u32 %s382_s25, 4  ;;  %s1469_s29 = sshll.u32 %s1969_s13, 8 }
  0x54   : > { %v393_v4 = vpack.c.bf16 %v392_v3, %v391_v2  ;;  %s384_s28 = scalar_lea.vmem [#allocation13], %s1431_s27  ;;  %s2188_s16 = scalar_lea.hbm %s2242_s9, %s1469_s29 }
  0x55   : > { %405 = vperm.xlu0 %1664, %v397_v7   ;;  %472 = vperm.xlu1 %1665, %v464_v9   ;;  %s1316_s21 = sshll.u32 %s384_s28, 4  ;;  %s2193_s23 = scalar_lea.sflag [#allocation7], %s382_s25  ;;  %s2190_s21 = int_to_ptr.vmem [resolvable:$true] %s1316_s21 }
  0x56   : > { %1497 = vmatpush3.bf16.msra.mxu0 %v393_v4  ;;  %s1895_s13 = smov [#allocation13]  }
  0x57   : > { %1508 = vmatprep.subr.bf16.mxu0 %v1889_v0 }
  0x59   : > { %1499 = vmatmul.mubr.msk.bf16.vlgmr.msra.gmra.mxu0 %vm413_vm1, %v1666_v5 }
  0x5a   : > { %1510 = vmatprep.mubr.msk.bf16.mxu0 %vm1890_vm0, %v1889_v0 }
  0xcc   : > { %v401_v10 = vpop.permute.xlu0 %400  ;;  %v468_v23 = vpop.permute.xlu1 %467 }
  0xd0   : > { %v406_v14 = vpop.permute.xlu0 %405  ;;  %v473_v28 = vpop.permute.xlu1 %472 }
 0x119   : > { %v451_v11 = vpop.f32.mrf.mxu0 }
 0x11a   : > { %v452_v13 = vadd.f32 %v451_v11, %v401_v10 }
 0x11b   : > { %v1500_v12 = vpop.f32.mrf.mxu0 }
 0x11c   : > { %v458_v18 = vmax.f32 %v452_v13, 0.0 }
 0x11d   : > { %v454_v15 = vpop.f32.mrf.mxu0 }
 0x11e   : > { %v455_v16 = vadd.f32 %v454_v15, %v406_v14 }
 0x11f   : > { %v1501_v17 = vpop.f32.mrf.mxu0 }
 0x120   : > { %v459_v19 = vmax.f32 %v455_v16, 0.0 }
 0x122   : > { %v462_v20 = vpack.c.bf16 %v459_v19, %v458_v18 }
 0x124   : > { %1503 = vmatpush3.bf16.msra.mxu1 %v462_v20 }
 0x125   : > { %1514 = vmatprep.subr.bf16.mxu1 %v1889_v0 }
 0x127   : > { %1505 = vmatmul.mubr.msk.bf16.vlgmr.msra.gmra.mxu1 %vm413_vm1, %v1667_v21 }
 0x128   : > { %1516 = vmatprep.mubr.msk.bf16.mxu1 %vm1890_vm0, %v1889_v0  ;;  %1515 = vmatpush3.bf16.msra.mxu1 %v1669_v22 }
 0x129   : > { %1526 = vmatprep.subr.bf16.mxu1 %v1889_v0 }
 0x1e7   : > { %v517_v24 = vpop.f32.mrf.mxu1 }
 0x1e8   : > { %v518_v25 = vadd.f32 %v517_v24, %v468_v23 }
 0x1e9   : > { %v1506_v26 = vpop.f32.mrf.mxu1 }
 0x1ea   : > { %v524_v27 = vmax.f32 %v518_v25, 0.0 }
 0x1eb   : > { %v520_v29 = vpop.f32.mrf.mxu1 }
 0x1ec   : > { %526 = vst.msk [vmem:[#allocation4] sm:$0xff] %vm413_vm1, %v524_v27  ;;  %v521_v30 = vadd.f32 %v520_v29, %v473_v28 }
 0x1ed   : > { %v1507_v31 = vpop.f32.mrf.mxu1 }
 0x1ee   : > { %v525_v32 = vmax.f32 %v521_v30, 0.0 }
 0x1f0   : > { %527 = vst.msk [vmem:[#allocation4 + $0x8] sm:$0xff] %vm413_vm1, %v525_v32  ;;  %v528_v33 = vpack.c.bf16 %v525_v32, %v524_v27 }
 0x1f2   : > { %583 = vxpose.xlu0.c.b16.start.end [1/1] (short) (narrow) %v528_v33, 16  ;;  %1509 = vmatpush3.bf16.msra.mxu0 %v528_v33 }
 0x1f3   : > { %1520 = vmatprep.subr.bf16.mxu0 %v1889_v0 }
 0x1f5   : > { %1511 = vmatmul.mubr.msk.bf16.vlgmr.msra.gmra.mxu0 %vm413_vm1, %v1668_v34 }
 0x1f6   : > { %1521 = vmatpush3.bf16.msra.mxu0 %v1670_v35  ;;  %1522 = vmatprep.mubr.msk.bf16.mxu0 %vm1890_vm0, %v1889_v0 }
 0x1f7   : > { %1532 = vmatprep.subr.bf16.mxu0 %v1889_v0 }
 0x254   : > { %v591_v36 = vpop.trf.xlu0 }
 0x255   : > { %1517 = vmatmul.mubr.msk.bf16.vlgmr.msra.gmra.mxu1 %vm413_vm1, %v591_v36  ;;  %1523 = vmatmul.mubr.msk.bf16.vlgmr.msra.gmra.mxu0 %vm413_vm1, %v591_v36 }
 0x256   : > { %1528 = vmatprep.mubr.msk.bf16.mxu1 %vm1890_vm0, %v1889_v0  ;;  %1534 = vmatprep.mubr.msk.bf16.mxu0 %vm1890_vm0, %v1889_v0 }
 0x2b5   : > { %v573_v37 = vpop.f32.mrf.mxu0 }
 0x2b7   : > { %v1512_v38 = vpop.f32.mrf.mxu0 }
 0x2b9   : > { %v576_v39 = vpop.f32.mrf.mxu0 }
 0x2ba   : > { %v580_v40 = vpack.c.bf16 %v576_v39, %v573_v37 }
 0x2bb   : > { %v1513_v41 = vpop.f32.mrf.mxu0 }
 0x2bc   : > { %v741_v42 = vsel %vm739_vm2, %v580_v40, 0  ;;  %v880_v43 = vrot.slane %v580_v40, 2  ;;  %v1020_v45 = vrot.slane %v580_v40, 4  ;;  %v1160_v46 = vrot.slane %v580_v40, 6 }
 0x2bd   : > { %1527 = vmatpush3.bf16.msra.mxu1 %v741_v42 }
 0x2be   : > { %1538 = vmatprep.subr.bf16.mxu1 %v1889_v0  ;;  %v885_v44 = vsel %vm739_vm2, %v880_v43, 0  ;;  %v1025_v47 = vsel %vm739_vm2, %v1020_v45, 0  ;;  %v1165_v48 = vsel %vm739_vm2, %v1160_v46, 0 }
 0x315   : > { %v642_v50 = vpop.f32.mrf.mxu1  ;;  %v698_v51 = vpop.f32.mrf.mxu0 }
 0x316   : > { %v1465_v52 = vpack.c.bf16 %v642_v50, %v642_v50  ;;  %v699_v53 = vadd.f32 %v1442_v49, %v698_v51 }
 0x317   : > { %v1518_v54 = vpop.f32.mrf.mxu1  ;;  %v1524_v55 = vpop.f32.mrf.mxu0 }
 0x318   : > { %714 = vst.msk [vmem:[#allocation2] sm:$0xf] %vm713_vm3, %v1465_v52  ;;  %v1467_v56 = vpack.c.bf16 %v699_v53, %v699_v53 }
 0x319   : > { %v645_v57 = vpop.f32.mrf.mxu1  ;;  %v701_v58 = vpop.f32.mrf.mxu0 }
 0x31a   : > { %724 = vst.msk [vmem:[#allocation3] sm:$0xf] %vm713_vm3, %v1467_v56  ;;  %v1466_v59 = vpack.c.bf16 %v645_v57, %v645_v57  ;;  %v702_v60 = vadd.f32 %v1442_v49, %v701_v58 }
 0x31b   : > { %v1519_v61 = vpop.f32.mrf.mxu1  ;;  %v1525_v62 = vpop.f32.mrf.mxu0 }
 0x31c   : > { %715 = vst.msk [vmem:[#allocation2 + $0x4] sm:$0xf] %vm713_vm3, %v1466_v59  ;;  %v1468_v63 = vpack.c.bf16 %v702_v60, %v702_v60 }
 0x31e   : > { %725 = vst.msk [vmem:[#allocation3 + $0x4] sm:$0xf] %vm713_vm3, %v1468_v63 }
 0x323   : > { %v1671_v1 = vld [vmem:[#allocation2] sm:$0xff]  }
 0x324   : > { %877 = vrot.lane.b32.xlu1 %v1671_v1, %s1892_s17  ;;  %1529 = vmatmul.mubr.msk.bf16.vlgmr.msra.gmra.mxu1 %vm735_vm4, %v1671_v1 }
 0x325   : > { %1539 = vmatpush3.bf16.msra.mxu1 %v885_v44  ;;  %1540 = vmatprep.mubr.msk.bf16.mxu1 %vm1890_vm0, %v1889_v0  ;;  %v2148_v37 = vld [vmem:[#allocation3] sm:$0xff]  }
 0x326   : > { %1550 = vmatprep.subr.bf16.mxu1 %v1889_v0 }
 0x328   : > { %1018 = vrot.lane.b32.xlu1 %v1671_v1, %s1893_s22 }
 0x32c   : > { %1158 = vrot.lane.b32.xlu1 %v1671_v1, %s1894_s26 }
 0x396   : > { %v878_v2 = vpop.permute.xlu1 %877 }
 0x397   : > { %1541 = vmatmul.mubr.msk.bf16.vlgmr.msra.gmra.mxu1 %vm735_vm4, %v878_v2 }
 0x398   : > { %1551 = vmatpush3.bf16.msra.mxu1 %v1025_v47  ;;  %1552 = vmatprep.mubr.msk.bf16.mxu1 %vm1890_vm0, %v1889_v0 }
 0x399   : > { %1562 = vmatprep.subr.bf16.mxu1 %v1889_v0 }
 0x39a   : > { %v1019_v3 = vpop.permute.xlu1 %1018 }
 0x39e   : > { %v1159_v4 = vpop.permute.xlu1 %1158 }
 0x39f   : > { %1553 = vmatmul.mubr.msk.bf16.vlgmr.msra.gmra.mxu1 %vm735_vm4, %v1019_v3 }
 0x3a0   : > { %1563 = vmatpush3.bf16.msra.mxu1 %v1165_v48  ;;  %1564 = vmatprep.mubr.msk.bf16.mxu1 %vm1890_vm0, %v1889_v0 }
 0x3a7   : > { %1565 = vmatmul.mubr.msk.bf16.vlgmr.msra.gmra.mxu1 %vm735_vm4, %v1159_v4 }
 0x3e4   : > { %v777_v5 = vpop.f32.mrf.mxu1 }
 0x3e5   : > { %v784_v6 = vmul.f32 0.5, %v777_v5 }
 0x3e6   : > { %v1530_v7 = vpop.f32.mrf.mxu1 }
 0x3e7   : > { %v786_v8 = vsel %vm413_vm1, %v784_v6, -inf }
 0x3e8   : > { %787 = vmax.xlane.f32.xlu1 %v786_v8  ;;  %v780_v9 = vpop.f32.mrf.mxu1 }
 0x3e9   : > { %v785_v10 = vmul.f32 0.5, %v780_v9 }
 0x3ea   : > { %v1531_v11 = vpop.f32.mrf.mxu1 }
 0x3eb   : > { %v789_v12 = vsel %vm413_vm1, %v785_v10, -inf }
 0x3ec   : > { %790 = vmax.xlane.f32.xlu0 %v789_v12 }
 0x457   : > { %v921_v13 = vpop.f32.mrf.mxu1 }
 0x458   : > { %v928_v14 = vmul.f32 0.5, %v921_v13 }
 0x459   : > { %v1542_v15 = vpop.f32.mrf.mxu1 }
 0x45a   : > { %v930_v16 = vsel %vm413_vm1, %v928_v14, -inf }
 0x45b   : > { %931 = vmax.xlane.f32.xlu0 %v930_v16  ;;  %v924_v17 = vpop.f32.mrf.mxu1 }
 0x45c   : > { %v929_v18 = vmul.f32 0.5, %v924_v17 }
 0x45d   : > { %v1543_v19 = vpop.f32.mrf.mxu1 }
 0x45e   : > { %v933_v20 = vsel %vm413_vm1, %v929_v18, -inf }
 0x45f   : > { %934 = vmax.xlane.f32.xlu0 %v933_v20  ;;  %v1061_v21 = vpop.f32.mrf.mxu1 }
 0x460   : > { %v1068_v22 = vmul.f32 0.5, %v1061_v21 }
 0x461   : > { %v1554_v23 = vpop.f32.mrf.mxu1 }
 0x462   : > { %v1070_v24 = vsel %vm413_vm1, %v1068_v22, -inf }
 0x463   : > { %1071 = vmax.xlane.f32.xlu1 %v1070_v24  ;;  %v1064_v25 = vpop.f32.mrf.mxu1 }
 0x464   : > { %v1069_v26 = vmul.f32 0.5, %v1064_v25 }
 0x465   : > { %v1555_v27 = vpop.f32.mrf.mxu1 }
 0x466   : > { %v1073_v28 = vsel %vm413_vm1, %v1069_v26, -inf }
 0x467   : > { %1074 = vmax.xlane.f32.xlu0 %v1073_v28  ;;  %v1201_v29 = vpop.f32.mrf.mxu1 }
 0x468   : > { %v1208_v30 = vmul.f32 0.5, %v1201_v29 }
 0x469   : > { %v1566_v31 = vpop.f32.mrf.mxu1 }
 0x46a   : > { %v1210_v32 = vsel %vm413_vm1, %v1208_v30, -inf }
 0x46b   : > { %1211 = vmax.xlane.f32.xlu1 %v1210_v32  ;;  %v1204_v33 = vpop.f32.mrf.mxu1 }
 0x46c   : > { %v1209_v34 = vmul.f32 0.5, %v1204_v33 }
 0x46d   : > { %v1567_v35 = vpop.f32.mrf.mxu1 }
 0x46e   : > { %v1213_v36 = vsel %vm413_vm1, %v1209_v34, -inf }
 0x46f   : > { %1214 = vmax.xlane.f32.xlu0 %v1213_v36 }
 0x471   : > { %v788_v38 = vpop.xlane.xlu1 %787 }
 0x472   : > { %v792_v39 = vsub.f32 %v784_v6, %v788_v38 }
 0x474   : > { %v794_v41 = vmul.f32 1.442695, %v792_v39 }
 0x475   : > { %v791_v40 = vpop.xlane.xlu0 %790 }
 0x476   : > { %v793_v42 = vsub.f32 %v785_v10, %v791_v40  ;;  %1673 = vpow2.f32 %v794_v41 }
 0x478   : > { %v796_v43 = vmul.f32 1.442695, %v793_v42 }
 0x47a   : > { %1675 = vpow2.f32 %v796_v43 }
 0x47c   : > { %953 = vrot.lane.b32.xlu1 %v2148_v37, %s1892_s17  ;;  %s1809_s17 = scalar_lea.vmem %s2190_s21, 256 }
 0x47d   : > { %p1810_p9 = scmp.ne.s32.totalorder %s2190_s21, %s1809_s17 }
 0x47f   : > { %p1811_p12 = pnand %p1810_p9, %p1986_p5 }
 0x481   : > { %p1812_p13 = pneg %p1811_p12 }
 0x483   : > { %v1674_v44 = vpop.eup %1673 }
 0x484   : > { %v798_v45 = vsel %vm413_vm1, %v1674_v44, 0.0 }
 0x485   : > { %1093 = vrot.lane.b32.xlu0 %v2148_v37, %s1893_s22  ;;  %s1813_s22 = sshll.u32 %s1895_s13, 4  ;;  %s1814_s22 = int_to_ptr.vmem [resolvable:$false] %s1813_s22 }
 0x486   : > { %p1816_p4 = scmp.lt.s32.totalorder %s2190_s21, %s1814_s22 }
 0x487   : > { %v1676_v46 = vpop.eup %1675 }
 0x488   : > { %v801_v47 = vsel %vm413_vm1, %v1676_v46, 0.0 }
 0x4a0   : > { %799 = vadd.xlane.f32.xlu1 %v798_v45 }
 0x4a4   : > { %802 = vadd.xlane.f32.xlu0 %v801_v47 }
 0x4b1   : > { %1233 = vrot.lane.b32.xlu1 %v2148_v37, %s1894_s26  ;;  %s1815_s26 = scalar_lea.vmem %s1814_s22, 512 }
 0x4b2   : > { %p1817_p7 = scmp.lt.s32.totalorder %s1815_s26, %s1809_s17 }
 0x4b4   : > { %p1818_p8 = por %p1817_p7, %p1816_p4 }
 0x4b6   : > { %p1819_p11 = pnand %p1818_p8, %p1812_p13 }
 0x4e4   : > { %v932_v48 = vpop.xlane.xlu0 %931 }
 0x4e5   : > { %v936_v49 = vsub.f32 %v928_v14, %v932_v48 }
 0x4e7   : > { %v938_v50 = vmul.f32 1.442695, %v936_v49 }
 0x4e8   : > { %v935_v51 = vpop.xlane.xlu0 %934 }
 0x4e9   : > { %1677 = vpow2.f32 %v938_v50  ;;  %v937_v52 = vsub.f32 %v929_v18, %v935_v51  ;;  %v874_v51 = vld [vmem:[#allocation4] sm:$0xf] }
 0x4eb   : > { %v940_v53 = vmul.f32 1.442695, %v937_v52 }
 0x4ec   : > { %v1072_v54 = vpop.xlane.xlu1 %1071 }
 0x4ed   : > { %1679 = vpow2.f32 %v940_v53  ;;  %v1076_v55 = vsub.f32 %v1068_v22, %v1072_v54 }
 0x4ef   : > { %v1078_v56 = vmul.f32 1.442695, %v1076_v55 }
 0x4f0   : > { %v1075_v57 = vpop.xlane.xlu0 %1074 }
 0x4f1   : > { %1681 = vpow2.f32 %v1078_v56  ;;  %v1077_v58 = vsub.f32 %v1069_v26, %v1075_v57  ;;  %v1015_v57 = vld [vmem:[#allocation4 + $0x4] sm:$0xf] }
 0x4f3   : > { %v1080_v59 = vmul.f32 1.442695, %v1077_v58 }
 0x4f4   : > { %v1212_v60 = vpop.xlane.xlu1 %1211 }
 0x4f5   : > { %1683 = vpow2.f32 %v1080_v59  ;;  %v1216_v61 = vsub.f32 %v1208_v30, %v1212_v60 }
 0x4f6   : > { %v1678_v62 = vpop.eup %1677 }
 0x4f7   : > { %v1218_v63 = vmul.f32 1.442695, %v1216_v61  ;;  %v942_v1 = vsel %vm413_vm1, %v1678_v62, 0.0 }
 0x4f8   : > { %v1215_v2 = vpop.xlane.xlu0 %1214  ;;  %943 = vadd.xlane.f32.xlu0 %v942_v1  ;;  %v954_v15 = vpop.permute.xlu1 %953 }
 0x4f9   : > { %1685 = vpow2.f32 %v1218_v63  ;;  %v1217_v3 = vsub.f32 %v1209_v34, %v1215_v2 }
 0x4fa   : > { %v1680_v4 = vpop.eup %1679 }
 0x4fb   : > { %v1220_v5 = vmul.f32 1.442695, %v1217_v3  ;;  %v945_v6 = vsel %vm413_vm1, %v1680_v4, 0.0 }
 0x4fc   : > { %946 = vadd.xlane.f32.xlu0 %v945_v6  ;;  %v1094_v16 = vpop.permute.xlu0 %1093  ;;  %v1295_v6 = vld [vmem:[#allocation4 + $0xc] sm:$0xf] }
 0x4fd   : > { %1687 = vpow2.f32 %v1220_v5 }
 0x4fe   : > { %v1682_v7 = vpop.eup %1681 }
 0x4ff   : > { %v1082_v8 = vsel %vm413_vm1, %v1682_v7, 0.0 }
 0x500   : > { %1083 = vadd.xlane.f32.xlu1 %v1082_v8 }
 0x502   : > { %v1684_v9 = vpop.eup %1683 }
 0x503   : > { %v1085_v10 = vsel %vm413_vm1, %v1684_v9, 0.0 }
 0x504   : > { %1086 = vadd.xlane.f32.xlu0 %v1085_v10 }
 0x506   : > { %v1686_v11 = vpop.eup %1685 }
 0x507   : > { %v1222_v12 = vsel %vm413_vm1, %v1686_v11, 0.0 }
 0x508   : > { %1223 = vadd.xlane.f32.xlu0 %v1222_v12 }
 0x50a   : > { %v1688_v13 = vpop.eup %1687 }
 0x50b   : > { %v1225_v14 = vsel %vm413_vm1, %v1688_v13, 0.0 }
 0x50c   : > { %1226 = vadd.xlane.f32.xlu0 %v1225_v14 }
 0x529   : > { %v800_v17 = vpop.xlane.xlu1 %799 }
 0x52a   : > { %1689 = vrcp.f32 %v800_v17 }
 0x52d   : > { %v803_v18 = vpop.xlane.xlu0 %802  ;;  %815 = vxpose.xlu1.c.b16.start.end [1/1] (short) (narrow) %v2148_v37, 16  ;;  %v1234_v19 = vpop.permute.xlu1 %1233 }
 0x52e   : > { %1691 = vrcp.f32 %v803_v18 }
 0x531   : > { %1096 = vxpose.xlu1.c.b16.start.end [1/1] (short) (narrow) %v1094_v16, 16 }
 0x535   : > { %1236 = vxpose.xlu1.c.b16.start.end [1/1] (short) (narrow) %v1234_v19, 16 }
 0x537   : > { %v1690_v20 = vpop.eup %1689 }
 0x538   : > { %v806_v22 = vmul.f32 %v1690_v20, %v1674_v44 }
 0x539   : > { %956 = vxpose.xlu0.c.b16.start.end [1/1] (short) (narrow) %v954_v15, 16 }
 0x53b   : > { %v1692_v21 = vpop.eup %1691 }
 0x53c   : > { %v807_v23 = vmul.f32 %v1692_v21, %v1676_v46 }
 0x53e   : > { %v808_v24 = vpack.c.bf16 %v807_v23, %v806_v22 }
 0x540   : > { %1533 = vmatpush3.bf16.msra.mxu0 %v808_v24 }
 0x541   : > { %1544 = vmatprep.subr.bf16.mxu0 %v1889_v0 }
 0x581   : > { %v944_v25 = vpop.xlane.xlu0 %943 }
 0x582   : > { %1693 = vrcp.f32 %v944_v25 }
 0x585   : > { %v947_v26 = vpop.xlane.xlu0 %946 }
 0x586   : > { %1695 = vrcp.f32 %v947_v26 }
 0x589   : > { %v1084_v27 = vpop.xlane.xlu1 %1083 }
 0x58a   : > { %1697 = vrcp.f32 %v1084_v27 }
 0x58d   : > { %v1087_v28 = vpop.xlane.xlu0 %1086 }
 0x58e   : > { %1699 = vrcp.f32 %v1087_v28 }
 0x58f   : > { %v823_v29 = vpop.trf.xlu1  ;;  %v1694_v30 = vpop.eup %1693 }
 0x590   : > { %1535 = vmatmul.mubr.msk.bf16.vlgmr.msra.gmra.mxu0 %vm413_vm1, %v823_v29  ;;  %v950_v33 = vmul.f32 %v1694_v30, %v1678_v62  ;;  %v1155_v62 = vld [vmem:[#allocation4 + $0x8] sm:$0xf] }
 0x591   : > { %v1224_v31 = vpop.xlane.xlu0 %1223  ;;  %1546 = vmatprep.mubr.msk.bf16.mxu0 %vm1890_vm0, %v1889_v0 }
 0x592   : > { %1701 = vrcp.f32 %v1224_v31 }
 0x593   : > { %v1696_v32 = vpop.eup %1695  ;;  %v1104_v44 = vpop.trf.xlu1 }
 0x594   : > { %v951_v34 = vmul.f32 %v1696_v32, %v1680_v4 }
 0x595   : > { %v1227_v35 = vpop.xlane.xlu0 %1226 }
 0x596   : > { %1703 = vrcp.f32 %v1227_v35  ;;  %v952_v36 = vpack.c.bf16 %v951_v34, %v950_v33 }
 0x597   : > { %v1698_v37 = vpop.eup %1697  ;;  %v1244_v49 = vpop.trf.xlu1 }
 0x598   : > { %1545 = vmatpush3.bf16.msra.mxu0 %v952_v36  ;;  %v1090_v40 = vmul.f32 %v1698_v37, %v1682_v7 }
 0x599   : > { %1556 = vmatprep.subr.bf16.mxu0 %v1889_v0 }
 0x59b   : > { %v1700_v38 = vpop.eup %1699  ;;  %v964_v39 = vpop.trf.xlu0 }
 0x59c   : > { %1547 = vmatmul.mubr.msk.bf16.vlgmr.msra.gmra.mxu0 %vm413_vm1, %v964_v39  ;;  %v1091_v41 = vmul.f32 %v1700_v38, %v1684_v9 }
 0x59d   : > { %1558 = vmatprep.mubr.msk.bf16.mxu0 %vm1890_vm0, %v1889_v0 }
 0x59e   : > { %v1092_v42 = vpack.c.bf16 %v1091_v41, %v1090_v40 }
 0x59f   : > { %v1702_v43 = vpop.eup %1701 }
 0x5a0   : > { %1557 = vmatpush3.bf16.msra.mxu0 %v1092_v42  ;;  %v1230_v46 = vmul.f32 %v1702_v43, %v1686_v11 }
 0x5a1   : > { %1568 = vmatprep.subr.bf16.mxu0 %v1889_v0 }
 0x5a3   : > { %v1704_v45 = vpop.eup %1703 }
 0x5a4   : > { %1559 = vmatmul.mubr.msk.bf16.vlgmr.msra.gmra.mxu0 %vm413_vm1, %v1104_v44  ;;  %v1231_v47 = vmul.f32 %v1704_v45, %v1688_v13 }
 0x5a5   : > { %1570 = vmatprep.mubr.msk.bf16.mxu0 %vm1890_vm0, %v1889_v0 }
 0x5a6   : > { %v1232_v48 = vpack.c.bf16 %v1231_v47, %v1230_v46 }
 0x5a8   : > { %1569 = vmatpush3.bf16.msra.mxu0 %v1232_v48 }
 0x5ac   : > { %1571 = vmatmul.mubr.msk.bf16.vlgmr.msra.gmra.mxu0 %vm413_vm1, %v1244_v49 }
 0x650   : > { %v868_v50 = vpop.f32.mrf.mxu0 }
 0x651   : > { %v875_v52 = vadd.f32 %v874_v51, %v868_v50 }
 0x652   : > { %v1536_v53 = vpop.f32.mrf.mxu0 }
 0x653   : > { %876 = vst.msk [vmem:[#allocation4] sm:$0xf] %vm713_vm3, %v875_v52 }
 0x654   : > { %v871_v54 = vpop.f32.mrf.mxu0 }
 0x656   : > { %v1537_v55 = vpop.f32.mrf.mxu0 }
 0x65c   : > { %v1009_v56 = vpop.f32.mrf.mxu0 }
 0x65d   : > { %v1016_v58 = vadd.f32 %v1015_v57, %v1009_v56 }
 0x65e   : > { %v1548_v59 = vpop.f32.mrf.mxu0 }
 0x65f   : > { %1017 = vst.msk [vmem:[#allocation4 + $0x4] sm:$0xf] %vm713_vm3, %v1016_v58 }
 0x660   : > { %v1012_v0 = vpop.f32.mrf.mxu0 }
 0x662   : > { %v1549_v60 = vpop.f32.mrf.mxu0 }
 0x664   : > { %v1149_v61 = vpop.f32.mrf.mxu0 }
 0x665   : > { %v1156_v63 = vadd.f32 %v1155_v62, %v1149_v61 }
 0x666   : > { %v1560_v1 = vpop.f32.mrf.mxu0  ;;  %v1298_v2 = vld [vmem:[#allocation4] sm:$0xff] }
 0x667   : > { %1157 = vst.msk [vmem:[#allocation4 + $0x8] sm:$0xf] %vm713_vm3, %v1156_v63 }
 0x668   : > { %1300 = vst.msk [vmem:[%s384_s28] sm:$0xff] %vm413_vm1, %v1298_v2  ;;  %v1152_v3 = vpop.f32.mrf.mxu0 }
 0x66a   : > { %v1561_v4 = vpop.f32.mrf.mxu0 }
 0x66c   : > { %v1289_v5 = vpop.f32.mrf.mxu0 }
 0x66d   : > { %v1296_v7 = vadd.f32 %v1295_v6, %v1289_v5 }
 0x66e   : > { %v1572_v8 = vpop.f32.mrf.mxu0 }
 0x66f   : > { %1297 = vst.msk [vmem:[#allocation4 + $0xc] sm:$0xf] %vm713_vm3, %v1296_v7 }
 0x670   : > { %v1292_v9 = vpop.f32.mrf.mxu0 }
 0x672   : > { %v1573_v10 = vpop.f32.mrf.mxu0 }
 0x676   : > { %v1299_v11 = vld [vmem:[#allocation4 + $0x8] sm:$0xff] }
 0x677   : > { %1301 = vst.msk [vmem:[%s384_s28 + $0x8] sm:$0xff] %vm413_vm1, %v1299_v11 }
 0x678   : > { %1822 = shalt.err (!%p1819_p11)
}
 0x679   : > { %s1823_s25 = scalar_lea.hbm %s2188_s16, 256  ;;  %s1827_s29 = scalar_lea.hbm %s2242_s9, 512 }
 0x67a   : > { %p1824_p0 = scmp.ne.s32.totalorder %s2188_s16, %s1823_s25  ;;  %p1828_p3 = scmp.lt.s32.totalorder %s2188_s16, %s2242_s9 }
 0x67b   : > { %p1829_p10 = scmp.lt.s32.totalorder %s1827_s29, %s1823_s25 }
 0x67c   : > { %p1825_p2 = pnand %p1824_p0, %p1986_p5 }
 0x67d   : > { %p1830_p9 = por %p1829_p10, %p1828_p3 }
 0x67e   : > { %p1826_p1 = pneg %p1825_p2 }
 0x680   : > { %p1831_p12 = pnand %p1830_p9, %p1826_p1 }
 0x682   : > { %1834 = shalt.err (!%p1831_p12)
}
 0x683   : > { %s1896_s17 = smov 128   ;;  %s1897_s13 = smov 8  }
 0x684   : > { %1590 = dma.vmem_to_hbm [thread:$0]  (%p1986_p5), %s2190_s21, 256, %s2188_s16, %s2193_s23, %s1896_s17, %s1896_s17, %s1897_s13  }
 0x685 PF: > { %p1617_p13 = scmp.ge.s32.totalorder %s1881_s12, 2  ;;  %s1331_s22 = sand.u32 1, %s1869_s30  }
 0x686   : > { %s1332_s26 = scalar_lea.sflag [#allocation7], %s1331_s22 }
 0x687   : > { %p1606_p4 = pnand %p1617_p13, %p1990_p6 }
 0x689   : > { %p1607_p7 = pneg %p1606_p4 }
 0x68b   : > { %1864 = dma.done.wait (%p1607_p7), %s1332_s26, 256  }
 0x68c   : > { %1866 = vsyncadd (%p1607_p7), %s1332_s26, 4294967040  ;;  %p22_p8 = scmp.ge.s32.totalorder %s1973_s15, 4   ;;  %s2247_s30 = smov %s1873_s10 }
 0x68d   : > { %s2248_s10 = smov %s1877_s11  ;;  %s2249_s11 = smov %s1984_s18 }
 0x68e   : > { %s2250_s12 = smov %s1973_s15  ;;  %24 = sbr.rel (!%p22_p8) target bundleno = 6 (0x6), region = 108 }
 0x693   :  { %1337 = vsyncpa [#allocation6], 1 }
 0x694   :  { %1339 = vsyncpa [#allocation6 + $0x1], 1 }
 0x695   :  { %1340 = vsyncpa [#allocation9], 1 }
 0x696   :  { %1341 = vsyncpa [#allocation12], 1 }
 0x697   :  { %1342 = vsyncpa [#allocation7], 1 }
 0x698   :  { %1344 = vsyncpa [#allocation7 + $0x1], 1 }

</bundles_post_ra>
